<compile_context>
chip_gen: v5e
topology: v5e:2x2
jax: 0.10.0
libtpu: 0.0.40
codegen_flags: <defaults>
</compile_context>

<pallas_src>
from functools import partial

import jax
import jax.numpy as jnp
from jax.experimental import pallas as pl
from jax.experimental.pallas import tpu as pltpu


def policy_net_kernel(xt_ref, w1_ref, b1_ref, w2_ref, b2_ref, ot_ref):
    """One batch tile, fully transposed so the batch sits on the lane axis.

    xt_ref : (S, TB) f32  states, batch on lanes
    w1_ref : (H, S)  f32  fc1.weight (torch layout)
    b1_ref : (H, 1)  f32  fc1.bias
    w2_ref : (A, H)  f32  fc2.weight (torch layout)
    b2_ref : (A, 1)  f32  fc2.bias
    ot_ref : (A, TB) f32  softmax probabilities, batch on lanes (lane-dense)
    """
    # fc1 + ReLU, f32 throughout (MXU is ~idle at these shapes).
    h_t = jnp.dot(w1_ref[...], xt_ref[...], preferred_element_type=jnp.float32)
    h_t = jnp.maximum(h_t + b1_ref[...], 0.0)                       # (H, TB)

    # fc2 -> transposed logits (A, TB).
    logits_t = (jnp.dot(w2_ref[...], h_t, preferred_element_type=jnp.float32)
                + b2_ref[...])

    if ot_ref.shape[0] == 2:
        # 2-action softmax == sigmoid of the logit difference: exact, no
        # cross-lane reductions, and the two rows sum to exactly 1.
        p0 = 1.0 / (1.0 + jnp.exp(logits_t[1:2, :] - logits_t[0:1, :]))  # (1, TB)
        ot_ref[0:1, :] = p0
        ot_ref[1:2, :] = 1.0 - p0
    else:
        # General action count: numerically stable softmax along the (small)
        # sublane axis.
        m = jnp.max(logits_t, axis=0, keepdims=True)
        e = jnp.exp(logits_t - m)
        ot_ref[...] = e / jnp.sum(e, axis=0, keepdims=True)


def _batch_dim_semantics():
    # CORE_PARALLEL shards the batch-tile grid axis across v7x's two
    # TensorCores (plain "parallel" does not guarantee that); single-TC chips
    # (v5e / v6e) take the PARALLEL path, which costs nothing there.
    try:
        if getattr(jax.devices()[0], "num_cores", 1) > 1:
            return (pltpu.CORE_PARALLEL,)
    except Exception:
        pass
    return (pltpu.PARALLEL,)


def policy_net_probs_t(x_t, w1, b1, w2, b2, *, block_b=1024):
    """Transposed forward: x_t (S, B) f32 -> probs_t (A, B) f32 (batch on lanes)."""
    S, B = x_t.shape
    H, S_w = w1.shape
    A, H_w = w2.shape
    assert S_w == S and H_w == H and b1.shape == (H, 1) and b2.shape == (A, 1)

    # Whole batch in one grid step when it fits comfortably; otherwise
    # block_b-wide lane tiles (default 1024; ~0.5 MiB residency, fine on
    # v5e/v6e/v7x).  A ragged last tile is masked by Pallas.
    tb = B if B <= block_b else block_b
    assert tb == B or tb % 128 == 0, "batch tile must be lane-aligned"
    grid = (pl.cdiv(B, tb),)

    return pl.pallas_call(
        policy_net_kernel,
        out_shape=jax.ShapeDtypeStruct((A, B), jnp.float32),
        grid=grid,
        in_specs=[
            pl.BlockSpec((S, tb), lambda i: (0, i)),    # per-step batch tile
            pl.BlockSpec((H, S), lambda i: (0, 0)),     # fc1.weight, resident
            pl.BlockSpec((H, 1), lambda i: (0, 0)),     # fc1.bias,   resident
            pl.BlockSpec((A, H), lambda i: (0, 0)),     # fc2.weight, resident
            pl.BlockSpec((A, 1), lambda i: (0, 0)),     # fc2.bias,   resident
        ],
        out_specs=pl.BlockSpec((A, tb), lambda i: (0, i)),
        compiler_params=pltpu.CompilerParams(
            dimension_semantics=_batch_dim_semantics()),
    )(x_t, w1, b1, w2, b2)


@partial(jax.jit, static_argnames=("block_b",))
def policy_net_forward(x, w1, b1, w2, b2, *, block_b=1024):
    """Torch-equivalent forward: x (B, S) f32 -> softmax probs (B, A) f32.

    The two tiny transposes only re-orient the (B,S)/(B,A) views around the
    lane-dense kernel; rollout code that keeps states / probs in
    (feature, batch) layout can call policy_net_probs_t directly and skip
    both.  (Fusing PPO action sampling / log-prob into the kernel tail would
    avoid writing probabilities to HBM at all - out of scope here.)
    """
    probs_t = policy_net_probs_t(x.T, w1, b1, w2, b2, block_b=block_b)
    return probs_t.T


def init_params(key, state_dim, hidden_dim, action_dim):
    # torch.nn.Linear default init: U(-1/sqrt(fan_in), 1/sqrt(fan_in)); weights
    # kept in torch's (out_features, in_features) layout, biases stored as
    # (out_features, 1) columns so they broadcast over the lane/batch axis.
    k1, k2, k3, k4 = jax.random.split(key, 4)
    bound1 = 1.0 / float(state_dim) ** 0.5
    bound2 = 1.0 / float(hidden_dim) ** 0.5
    w1 = jax.random.uniform(k1, (hidden_dim, state_dim), jnp.float32, -bound1, bound1)
    b1 = jax.random.uniform(k2, (hidden_dim, 1), jnp.float32, -bound1, bound1)
    w2 = jax.random.uniform(k3, (action_dim, hidden_dim), jnp.float32, -bound2, bound2)
    b2 = jax.random.uniform(k4, (action_dim, 1), jnp.float32, -bound2, bound2)
    return w1, b1, w2, b2


if __name__ == "__main__":
    # CartPole-scale PolicyNet: state_dim=4, hidden_dim=128, action_dim=2.
    state_dim, hidden_dim, action_dim = 4, 128, 2

    key = jax.random.PRNGKey(0)
    k_params, k_x1, k_x2 = jax.random.split(key, 3)
    w1, b1, w2, b2 = init_params(k_params, state_dim, hidden_dim, action_dim)

    def reference(x):
        # Pure-JAX f32 reference (HIGHEST matmul precision, so the only error
        # left is the kernel's default one-pass MXU rounding).
        h = jnp.maximum(
            jnp.matmul(x, w1.T, precision=jax.lax.Precision.HIGHEST) + b1[:, 0], 0.0)
        logits = jnp.matmul(h, w2.T, precision=jax.lax.Precision.HIGHEST) + b2[:, 0]
        return jax.nn.softmax(logits, axis=1)

    # (batch, batch-tile): a single full-batch tile, then a multi-step grid
    # with a ragged (masked) last tile.
    for batch, kx, block_b in ((8, k_x1, 1024), (200, k_x2, 128)):
        x = jax.random.normal(kx, (batch, state_dim), jnp.float32)
        probs = jax.block_until_ready(
            policy_net_forward(x, w1, b1, w2, b2, block_b=block_b))
        assert probs.shape == (batch, action_dim)
        assert jnp.allclose(jnp.sum(probs, axis=1), 1.0, atol=1e-5)
        assert jnp.allclose(probs, reference(x), atol=1e-2), \
            "mismatch vs f32 reference"

    print("KERNEL_OK")
</pallas_src>

<mosaic_0001>
module attributes {stable_mosaic.version = 11 : i64} {
  func.func @policy_net_kernel(%arg0: i32, %arg1: memref<4x8xf32, #tpu.memory_space<vmem>>, %arg2: memref<128x4xf32, #tpu.memory_space<vmem>>, %arg3: memref<128x1xf32, #tpu.memory_space<vmem>>, %arg4: memref<2x128xf32, #tpu.memory_space<vmem>>, %arg5: memref<2x1xf32, #tpu.memory_space<vmem>>, %arg6: memref<2x8xf32, #tpu.memory_space<vmem>>) attributes {dimension_semantics = [#tpu.dimension_semantics<parallel>], iteration_bounds = array<i64: 1>, scalar_prefetch = 0 : i64, scratch_operands = 0 : i64, tpu.core_type = #tpu.core_type<tc>, window_params = [{transform_indices = @transform_0, window_bounds = array<i64: 4, 8>}, {pipeline_mode = #tpu.pipeline_mode<synchronous>, transform_indices = @transform_1, window_bounds = array<i64: 128, 4>}, {pipeline_mode = #tpu.pipeline_mode<synchronous>, transform_indices = @transform_2, window_bounds = array<i64: 128, 1>}, {pipeline_mode = #tpu.pipeline_mode<synchronous>, transform_indices = @transform_3, window_bounds = array<i64: 2, 128>}, {pipeline_mode = #tpu.pipeline_mode<synchronous>, transform_indices = @transform_4, window_bounds = array<i64: 2, 1>}, {transform_indices = @transform_5, window_bounds = array<i64: 2, 8>}]} {
    %c0 = arith.constant 0 : index
    %c0_0 = arith.constant 0 : index
    %0 = vector.load %arg2[%c0, %c0_0] : memref<128x4xf32, #tpu.memory_space<vmem>>, vector<128x4xf32>
    %c0_1 = arith.constant 0 : index
    %c0_2 = arith.constant 0 : index
    %1 = vector.load %arg1[%c0_1, %c0_2] : memref<4x8xf32, #tpu.memory_space<vmem>>, vector<4x8xf32>
    %cst = arith.constant dense<0.000000e+00> : vector<128x8xf32>
    %2 = tpu.matmul %0, %1, %cst {dimension_numbers = #tpu.dot_dimension_numbers<[1], [0], [0], [1], [0, 0, 1, 1], [], []>} : vector<128x4xf32>, vector<4x8xf32>, vector<128x8xf32> -> vector<128x8xf32>
    %c0_3 = arith.constant 0 : index
    %c0_4 = arith.constant 0 : index
    %3 = vector.load %arg3[%c0_3, %c0_4] : memref<128x1xf32, #tpu.memory_space<vmem>>, vector<128x1xf32>
    %4 = vector.broadcast %3 : vector<128x1xf32> to vector<128x8xf32>
    %5 = arith.addf %2, %4 : vector<128x8xf32>
    %cst_5 = arith.constant 0.000000e+00 : f32
    %6 = vector.broadcast %cst_5 : f32 to vector<128x8xf32>
    %7 = arith.maximumf %5, %6 : vector<128x8xf32>
    %c0_6 = arith.constant 0 : index
    %c0_7 = arith.constant 0 : index
    %8 = vector.load %arg4[%c0_6, %c0_7] : memref<2x128xf32, #tpu.memory_space<vmem>>, vector<2x128xf32>
    %cst_8 = arith.constant dense<0.000000e+00> : vector<2x8xf32>
    %9 = tpu.matmul %8, %7, %cst_8 {dimension_numbers = #tpu.dot_dimension_numbers<[1], [0], [0], [1], [0, 0, 1, 1], [], []>} : vector<2x128xf32>, vector<128x8xf32>, vector<2x8xf32> -> vector<2x8xf32>
    %c0_9 = arith.constant 0 : index
    %c0_10 = arith.constant 0 : index
    %10 = vector.load %arg5[%c0_9, %c0_10] : memref<2x1xf32, #tpu.memory_space<vmem>>, vector<2x1xf32>
    %11 = vector.broadcast %10 : vector<2x1xf32> to vector<2x8xf32>
    %12 = arith.addf %9, %11 : vector<2x8xf32>
    %13 = vector.extract_strided_slice %12 {offsets = [1, 0], sizes = [1, 8], strides = [1, 1]} : vector<2x8xf32> to vector<1x8xf32>
    %14 = vector.extract_strided_slice %12 {offsets = [0, 0], sizes = [1, 8], strides = [1, 1]} : vector<2x8xf32> to vector<1x8xf32>
    %15 = arith.subf %13, %14 : vector<1x8xf32>
    %16 = math.exp %15 : vector<1x8xf32>
    %cst_11 = arith.constant 1.000000e+00 : f32
    %17 = vector.broadcast %cst_11 : f32 to vector<1x8xf32>
    %18 = arith.addf %17, %16 : vector<1x8xf32>
    %cst_12 = arith.constant 1.000000e+00 : f32
    %19 = vector.broadcast %cst_12 : f32 to vector<1x8xf32>
    %20 = arith.divf %19, %18 : vector<1x8xf32>
    %c0_13 = arith.constant 0 : index
    %c0_14 = arith.constant 0 : index
    %21 = vector.load %arg6[%c0_13, %c0_14] : memref<2x8xf32, #tpu.memory_space<vmem>>, vector<1x8xf32>
    tpu.vector_store %arg6[%c0_13, %c0_14], %20 {strides = array<i32>} : memref<2x8xf32, #tpu.memory_space<vmem>>, vector<1x8xf32>,
    %cst_15 = arith.constant 1.000000e+00 : f32
    %22 = vector.broadcast %cst_15 : f32 to vector<1x8xf32>
    %23 = arith.subf %22, %20 : vector<1x8xf32>
    %c1 = arith.constant 1 : index
    %c0_16 = arith.constant 0 : index
    %24 = vector.load %arg6[%c1, %c0_16] : memref<2x8xf32, #tpu.memory_space<vmem>>, vector<1x8xf32>
    tpu.vector_store %arg6[%c1, %c0_16], %23 {strides = array<i32>} : memref<2x8xf32, #tpu.memory_space<vmem>>, vector<1x8xf32>,
    return
  }
  func.func @transform_0(%arg0: i32) -> (i32, i32) {
    %c0_i32 = arith.constant 0 : i32
    %c0_i32_0 = arith.constant 0 : i32
    return %c0_i32, %arg0 : i32, i32
  }
  func.func @transform_1(%arg0: i32) -> (i32, i32) {
    %c0_i32 = arith.constant 0 : i32
    %c0_i32_0 = arith.constant 0 : i32
    %c0_i32_1 = arith.constant 0 : i32
    return %c0_i32, %c0_i32_0 : i32, i32
  }
  func.func @transform_2(%arg0: i32) -> (i32, i32) {
    %c0_i32 = arith.constant 0 : i32
    %c0_i32_0 = arith.constant 0 : i32
    %c0_i32_1 = arith.constant 0 : i32
    return %c0_i32, %c0_i32_0 : i32, i32
  }
  func.func @transform_3(%arg0: i32) -> (i32, i32) {
    %c0_i32 = arith.constant 0 : i32
    %c0_i32_0 = arith.constant 0 : i32
    %c0_i32_1 = arith.constant 0 : i32
    return %c0_i32, %c0_i32_0 : i32, i32
  }
  func.func @transform_4(%arg0: i32) -> (i32, i32) {
    %c0_i32 = arith.constant 0 : i32
    %c0_i32_0 = arith.constant 0 : i32
    %c0_i32_1 = arith.constant 0 : i32
    return %c0_i32, %c0_i32_0 : i32, i32
  }
  func.func @transform_5(%arg0: i32) -> (i32, i32) {
    %c0_i32 = arith.constant 0 : i32
    %c0_i32_0 = arith.constant 0 : i32
    return %c0_i32, %arg0 : i32, i32
  }
}

</mosaic_0001>

<bundles_post_ra>
// kernel: policy_net_forward.1
= control target key start
LH: loop header
LB: loop body
LE: loop exit
PB: predicated region body
PF: predicated region fallthrough
CT: control target
= control target key end

     0   :  { %vm183_vm0 = vcmask 1043456   ;;  %v391_v3 = vmov 0   ;;  %vm134_vm1 = vcmask 31744   ;;  %s553_s0 = inlined_call_operand.vmem [shape: f32[4,8], index: 0, kind: input, shape index: {}]   ;;  %s554_s1 = inlined_call_operand.vmem [shape: f32[128,4], index: 1, kind: input, shape index: {}]   ;;  %s555_s2 = inlined_call_operand.vmem [shape: f32[128,1], index: 2, kind: input, shape index: {}]   ;;  %s556_s3 = inlined_call_operand.vmem [shape: f32[2,128], index: 3, kind: input, shape index: {}]   ;;  %s557_s4 = inlined_call_operand.vmem [shape: f32[2,1], index: 4, kind: input, shape index: {}]   ;;  %s558_s5 = inlined_call_operand.hbm [shape: f32[2,8], index: 5, kind: output, shape index: {}]  }
   0x1   :  { %v37_v0 = vld [vmem:[%s553_s0] sm:$0xf]  ;;  %v53_v1 = vld [vmem:[%s555_s2 + $0x78] sm:$0xff]  ;;  %358 = vset.pattern.permute.xlu0 %v391_v3  ;;  %v27_v4 = vld [vmem:[%s554_s1 + $0x30] sm:$0xff]  ;;  %359 = vset.pattern.permute.xlu1 %v391_v3 }
   0x2   :  { %v21_v2 = vld [vmem:[%s554_s1] sm:$0xff]  ;;  %337 = vmatpush.msk.msra.mxu0 %vm183_vm0, %v37_v0  ;;  %354 = vmatpush.msk.msra.mxu2 %vm183_vm0, %v37_v0  ;;  %v51_v6 = vld [vmem:[%s555_s2 + $0x68] sm:$0xff]  ;;  %v49_v7 = vld [vmem:[%s555_s2 + $0x58] sm:$0xff] }
   0x3   :  { %v33_v5 = vld [vmem:[%s554_s1 + $0x60] sm:$0xff]  ;;  %355 = vmatpush.msk.msra.mxu3 %vm183_vm0, %v37_v0  ;;  %131 = vperm.xlu0 %358, %v53_v1   ;;  %v52_v8 = vld [vmem:[%s555_s2 + $0x70] sm:$0xff]  ;;  %v22_v9 = vld [vmem:[%s554_s1 + $0x8] sm:$0xff] }
   0x4   :  { %338 = vmatmul.msk.f32.vlgmr.msra.gmra.mxu0 %vm134_vm1, %v21_v2  ;;  %344 = vmatmul.msk.f32.vlgmr.msra.gmra.mxu2 %vm134_vm1, %v27_v4  ;;  %v28_v10 = vld [vmem:[%s554_s1 + $0x38] sm:$0xff]  ;;  %v34_v11 = vld [vmem:[%s554_s1 + $0x68] sm:$0xff] }
   0x5   :  { %350 = vmatmul.msk.f32.vlgmr.msra.gmra.mxu3 %vm134_vm1, %v33_v5  ;;  %360 = vset.pattern.permute.xlu2 %v391_v3 }
   0x6   :  { %121 = vperm.xlu1 %359, %v51_v6   ;;  %111 = vperm.xlu2 %360, %v49_v7  }
   0x7   :  { %10 = vsyncpa [#allocation3], 0  ;;  %v50_v12 = vld [vmem:[%s555_s2 + $0x60] sm:$0xff]  ;;  %v48_v13 = vld [vmem:[%s555_s2 + $0x50] sm:$0xff]  ;;  %vm317_vm5 = vcmask 58369   ;;  %s328_s10 = sshll.u32 %s558_s5, 4  ;;  %s329_s10 = int_to_ptr.hbm [resolvable:$true] %s328_s10 }
   0x8   :  { %v47_v14 = vld [vmem:[%s555_s2 + $0x48] sm:$0xff]  ;;  %v23_v15 = vld [vmem:[%s554_s1 + $0x10] sm:$0xff]  ;;  %v29_v16 = vld [vmem:[%s554_s1 + $0x40] sm:$0xff] }
   0x9   :  { %v35_v17 = vld [vmem:[%s554_s1 + $0x70] sm:$0xff]  ;;  %v46_v18 = vld [vmem:[%s555_s2 + $0x40] sm:$0xff]  ;;  %v45_v19 = vld [vmem:[%s555_s2 + $0x38] sm:$0xff] }
   0xa   :  { %v44_v20 = vld [vmem:[%s555_s2 + $0x30] sm:$0xff]  ;;  %v24_v21 = vld [vmem:[%s554_s1 + $0x18] sm:$0xff]  ;;  %v30_v22 = vld [vmem:[%s554_s1 + $0x48] sm:$0xff] }
   0xb   :  { %126 = vperm.xlu0 %358, %v52_v8   ;;  %v36_v23 = vld [vmem:[%s554_s1 + $0x78] sm:$0xff]  ;;  %v43_v24 = vld [vmem:[%s555_s2 + $0x28] sm:$0xff]  ;;  %v42_v25 = vld [vmem:[%s555_s2 + $0x20] sm:$0xff] }
   0xc   :  { %339 = vmatmul.msk.f32.gmra.mxu0 %vm134_vm1, %v22_v9  ;;  %345 = vmatmul.msk.f32.gmra.mxu2 %vm134_vm1, %v28_v10  ;;  %v41_v26 = vld [vmem:[%s555_s2 + $0x18] sm:$0xff]  ;;  %v25_v27 = vld [vmem:[%s554_s1 + $0x20] sm:$0xff]  ;;  %v31_v28 = vld [vmem:[%s554_s1 + $0x50] sm:$0xff] }
   0xd   :  { %351 = vmatmul.msk.f32.gmra.mxu3 %vm134_vm1, %v34_v11  ;;  %v40_v29 = vld [vmem:[%s555_s2 + $0x10] sm:$0xff]  ;;  %v39_v30 = vld [vmem:[%s555_s2 + $0x8] sm:$0xff]  ;;  %v38_v31 = vld [vmem:[%s555_s2] sm:$0xff] }
   0xe   :  { %116 = vperm.xlu1 %359, %v50_v12   ;;  %106 = vperm.xlu2 %360, %v48_v13   ;;  %v26_v32 = vld [vmem:[%s554_s1 + $0x28] sm:$0xff]  ;;  %v32_v33 = vld [vmem:[%s554_s1 + $0x58] sm:$0xff]  ;;  %v269_v34 = vld [vmem:[%s557_s4] sm:$0x3] }
  0x13   :  { %101 = vperm.xlu0 %358, %v47_v14  }
  0x14   :  { %340 = vmatmul.msk.f32.gmra.mxu0 %vm134_vm1, %v23_v15  ;;  %346 = vmatmul.msk.f32.gmra.mxu2 %vm134_vm1, %v29_v16 }
  0x15   :  { %352 = vmatmul.msk.f32.gmra.mxu3 %vm134_vm1, %v35_v17 }
  0x16   :  { %96 = vperm.xlu1 %359, %v46_v18   ;;  %91 = vperm.xlu2 %360, %v45_v19  }
  0x1b   :  { %86 = vperm.xlu0 %358, %v44_v20  }
  0x1c   :  { %341 = vmatmul.msk.f32.gmra.mxu0 %vm134_vm1, %v24_v21  ;;  %347 = vmatmul.msk.f32.gmra.mxu2 %vm134_vm1, %v30_v22 }
  0x1d   :  { %353 = vmatmul.msk.f32.gmra.mxu3 %vm134_vm1, %v36_v23 }
  0x1e   :  { %81 = vperm.xlu1 %359, %v43_v24   ;;  %76 = vperm.xlu2 %360, %v42_v25  }
  0x23   :  { %71 = vperm.xlu0 %358, %v41_v26  }
  0x24   :  { %342 = vmatmul.msk.f32.gmra.mxu0 %vm134_vm1, %v25_v27  ;;  %348 = vmatmul.msk.f32.gmra.mxu2 %vm134_vm1, %v31_v28 }
  0x26   :  { %66 = vperm.xlu1 %359, %v40_v29   ;;  %61 = vperm.xlu2 %360, %v39_v30  }
  0x2b   :  { %56 = vperm.xlu0 %358, %v38_v31  }
  0x2c   :  { %343 = vmatmul.msk.f32.gmra.mxu0 %vm134_vm1, %v26_v32  ;;  %349 = vmatmul.msk.f32.gmra.mxu2 %vm134_vm1, %v32_v33 }
  0x2e   :  { %272 = vperm.xlu1 %359, %v269_v34  }
  0x60   :  { %v112_v43 = vpop.permute.xlu2 %111 }
  0x68   :  { %v107_v53 = vpop.permute.xlu2 %106 }
  0x70   :  { %v92_v0 = vpop.permute.xlu2 %91 }
  0x75   :  { %v132_v38 = vpop.permute.xlu0 %131 }
  0x78   :  { %v122_v42 = vpop.permute.xlu1 %121  ;;  %v77_v11 = vpop.permute.xlu2 %76 }
  0x7d   :  { %v127_v46 = vpop.permute.xlu0 %126 }
  0x80   :  { %v117_v52 = vpop.permute.xlu1 %116  ;;  %v62_v25 = vpop.permute.xlu2 %61 }
  0x81   :  { %v541_v35 = vpop.f32.mrf.mxu0 }
  0x85   :  { %v102_v56 = vpop.permute.xlu0 %101 }
  0x87   :  { %v222_v36 = vpop.f32.mrf.mxu2 }
  0x88   :  { %v240_v37 = vpop.f32.mrf.mxu3  ;;  %v97_v63 = vpop.permute.xlu1 %96 }
  0x89   :  { %v543_v39 = vpop.f32.mrf.mxu0  ;;  %v241_v58 = vadd.f32 %v240_v37, %v117_v52 }
  0x8a   :  { %v208_v30 = vadd.f32 %v543_v39, %v62_v25 }
  0x8b   :  { %v264_v62 = vmax.f32 %v241_v58, 0.0 }
  0x8c   :  { %v253_v33 = vmax.f32 %v208_v30, 0.0 }
  0x8d   :  { %v87_v1 = vpop.permute.xlu0 %86 }
  0x8e   :  { %v223_v16 = vadd.f32 %v222_v36, %v87_v1  ;;  %v268_v36 = vld [vmem:[%s556_s3] sm:$0x3]  ;;  %s392_s3 = smov [#allocation2]  }
  0x8f   :  { %v225_v40 = vpop.f32.mrf.mxu2  ;;  %s326_s4 = sshll.u32 %s392_s3, 4  ;;  %s327_s4 = int_to_ptr.vmem [resolvable:$true] %s326_s4 }
  0x90   :  { %v243_v41 = vpop.f32.mrf.mxu3  ;;  %v82_v10 = vpop.permute.xlu1 %81  ;;  %v226_v12 = vadd.f32 %v225_v40, %v92_v0  ;;  %v258_v20 = vmax.f32 %v223_v16, 0.0 }
  0x91   :  { %v210_v47 = vpop.f32.mrf.mxu0  ;;  %v244_v54 = vadd.f32 %v243_v41, %v122_v42 }
  0x92   :  { %v259_v18 = vmax.f32 %v226_v12, 0.0 }
  0x93   :  { %v265_v60 = vmax.f32 %v244_v54, 0.0 }
  0x95   :  { %v72_v14 = vpop.permute.xlu0 %71 }
  0x97   :  { %v228_v44 = vpop.f32.mrf.mxu2 }
  0x98   :  { %v246_v45 = vpop.f32.mrf.mxu3  ;;  %v229_v8 = vadd.f32 %v228_v44, %v97_v63  ;;  %v67_v24 = vpop.permute.xlu1 %66 }
  0x99   :  { %v247_v50 = vadd.f32 %v246_v45, %v127_v46  ;;  %v213_v57 = vpop.f32.mrf.mxu0  ;;  %v211_v26 = vadd.f32 %v210_v47, %v67_v24 }
  0x9a   :  { %v260_v17 = vmax.f32 %v229_v8, 0.0  ;;  %v214_v22 = vadd.f32 %v213_v57, %v72_v14 }
  0x9b   :  { %v266_v59 = vmax.f32 %v247_v50, 0.0  ;;  %v254_v31 = vmax.f32 %v211_v26, 0.0 }
  0x9c   :  { %v255_v29 = vmax.f32 %v214_v22, 0.0 }
  0x9d   :  { %v57_v28 = vpop.permute.xlu0 %56 }
  0x9e   :  { %v205_v32 = vadd.f32 %v541_v35, %v57_v28 }
  0x9f   :  { %v231_v48 = vpop.f32.mrf.mxu2 }
  0xa0   :  { %v249_v49 = vpop.f32.mrf.mxu3  ;;  %v232_v6 = vadd.f32 %v231_v48, %v102_v56  ;;  %v252_v34 = vmax.f32 %v205_v32, 0.0  ;;  %v273_v37 = vpop.permute.xlu1 %272 }
  0xa1   :  { %v250_v51 = vadd.f32 %v249_v49, %v132_v38  ;;  %v216_v2 = vpop.f32.mrf.mxu0 }
  0xa2   :  { %v261_v13 = vmax.f32 %v232_v6, 0.0  ;;  %v217_v21 = vadd.f32 %v216_v2, %v77_v11 }
  0xa3   :  { %v267_v55 = vmax.f32 %v250_v51, 0.0 }
  0xa4   :  { %v256_v27 = vmax.f32 %v217_v21, 0.0 }
  0xa5   :  { %275 = vmatpush.msra.mxu1 %v267_v55 }
  0xa7   :  { %276 = vmatpush.msra.mxu1 %v266_v59  ;;  %v234_v61 = vpop.f32.mrf.mxu2 }
  0xa8   :  { %v235_v4 = vadd.f32 %v234_v61, %v107_v53 }
  0xa9   :  { %277 = vmatpush.msra.mxu1 %v265_v60  ;;  %v219_v15 = vpop.f32.mrf.mxu0 }
  0xaa   :  { %v262_v9 = vmax.f32 %v235_v4, 0.0  ;;  %v220_v19 = vadd.f32 %v219_v15, %v82_v10 }
  0xab   :  { %278 = vmatpush.msra.mxu1 %v264_v62 }
  0xac   :  { %v257_v23 = vmax.f32 %v220_v19, 0.0 }
  0xaf   :  { %v237_v3 = vpop.f32.mrf.mxu2 }
  0xb0   :  { %v238_v5 = vadd.f32 %v237_v3, %v112_v43 }
  0xb2   :  { %v263_v7 = vmax.f32 %v238_v5, 0.0 }
  0xb4   :  { %279 = vmatpush.msra.mxu1 %v263_v7 }
  0xb6   :  { %280 = vmatpush.msra.mxu1 %v262_v9 }
  0xb8   :  { %281 = vmatpush.msra.mxu1 %v261_v13 }
  0xba   :  { %282 = vmatpush.msra.mxu1 %v260_v17 }
  0xbc   :  { %283 = vmatpush.msra.mxu1 %v259_v18 }
  0xbe   :  { %284 = vmatpush.msra.mxu1 %v258_v20 }
  0xc0   :  { %285 = vmatpush.msra.mxu1 %v257_v23 }
  0xc2   :  { %286 = vmatpush.msra.mxu1 %v256_v27 }
  0xc4   :  { %287 = vmatpush.msra.mxu1 %v255_v29 }
  0xc6   :  { %288 = vmatpush.msra.mxu1 %v254_v31 }
  0xc8   :  { %289 = vmatpush.msra.mxu1 %v253_v33 }
  0xca   :  { %290 = vmatpush.msra.mxu1 %v252_v34 }
  0xcb   :  { %291 = vmatmul.f32.vlgmr.msra.gmra.mxu1 %v268_v36 }
 0x148   :  { %v292_v38 = vpop.f32.mrf.mxu1 }
 0x149   :  { %v293_v40 = vadd.f32 %v292_v38, %v273_v37 }
 0x14b   :  { %v296_v41 = vrot.slane %v293_v40, 7 }
 0x14d   :  { %v298_v39 = vsub.f32 %v293_v40, %v296_v41 }
 0x14f   :  { %v299_v42 = vmul.f32 1.442695, %v298_v39 }
 0x151   :  { %361 = vpow2.f32 %v299_v42 }
 0x157   :  { %v362_v43 = vpop.eup %361 }
 0x158   :  { %v301_v35 = vadd.f32 1.0, %v362_v43 }
 0x15a   :  { %363 = vrcp.f32 %v301_v35  ;;  %v313_v47 = vand.u32 2147483648, %v301_v35  ;;  %v311_v49 = vand.u32 2147483647, %v301_v35  ;;  %vm307_vm3 = vweird.f32 %v301_v35 }
 0x15c   :  { %v314_v51 = vor.u32 1.1754944e-38, %v313_v47  ;;  %vm312_vm6 = vcmp.eq.f32.partialorder %v311_v49, 8.507059e+37 }
 0x160   :  { %v364_v44 = vpop.eup %363 }
 0x161   :  { %v303_v45 = vmul.f32 %v364_v44, %v301_v35  ;;  %vm308_vm2 = vweird.f32 %v364_v44 }
 0x162   :  { %vm309_vm4 = vmor %vm307_vm3, %vm308_vm2 }
 0x163   :  { %v304_v46 = vsub.f32 1.0, %v303_v45 }
 0x165   :  { %v305_v48 = vmul.f32 %v364_v44, %v304_v46 }
 0x167   :  { %v306_v50 = vadd.f32 %v364_v44, %v305_v48 }
 0x169   :  { %v310_v52 = vsel %vm309_vm4, %v364_v44, %v306_v50 }
 0x16a   :  { %v315_v53 = vsel %vm312_vm6, %v314_v51, %v310_v52 }
 0x16b   :  { %318 = vst.msk [vmem:[#allocation2 - $0x1] sm:$0x2] %vm317_vm5, %v315_v53  ;;  %v319_v54 = vsub.f32 1.0, %v315_v53 }
 0x16d   :  { %320 = vst.msk [vmem:[#allocation2] sm:$0x2] %vm317_vm5, %v319_v54 }
 0x16e   :  { %331 = dma.vmem_to_hbm [thread:$0]  %s327_s4, 32, %s329_s10, [#allocation3]  }
 0x16f   :  { %389 = dma.done.wait [#allocation3], 32  }
 0x170   :  { %390 = vsyncadd [#allocation3], 4294967264 }
 0x171   :  { %336 = vsyncpa [#allocation3], 1 }

</bundles_post_ra>
